<compile_context>
chip_gen: v6e
topology: v6e:2x2x1
jax: 0.10.0
libtpu: 0.0.40
codegen_flags: <defaults>
</compile_context>

<pallas_src>
import functools

import jax
import jax.numpy as jnp
from jax.experimental import pallas as pl
from jax.experimental.pallas import tpu as pltpu

_LANE = 128


def _round_up(x, m):
    return ((x + m - 1) // m) * m


def _cdiv(a, b):
    return -(-a // b)


def _tpu_generation():
    """Best-effort (generation, physical VMEM bytes). Never raises."""
    kind = ""
    try:
        kind = jax.devices()[0].device_kind.lower()
    except Exception:
        pass
    vmem_cap = None
    try:
        vmem_cap = int(pltpu.get_tpu_info().vmem_capacity_bytes)
    except Exception:
        pass
    if "v7" in kind:
        return "v7x", vmem_cap or 64 * 1024 * 1024
    if "v6" in kind:
        return "v6e", vmem_cap or 128 * 1024 * 1024
    if "v5" in kind:
        return "v5e", vmem_cap or 128 * 1024 * 1024
    return "unknown", vmem_cap or 64 * 1024 * 1024   # conservative default


def _pick_tf(d_f, tf_pref=512):
    """Reduction (d_f) slab size. Returns (tf, df_p) with df_p % tf == 0 and
    df_p - d_f < 128 (no wasted zero columns beyond lane rounding)."""
    df_p = _round_up(max(int(d_f), 1), _LANE)
    if df_p <= 2 * tf_pref:            # small d_f: keep the whole reduction in one slab
        return df_p, df_p
    tf = min(tf_pref, df_p)
    while tf > _LANE and df_p % tf != 0:
        tf -= _LANE
    return tf, df_p


def _pick_row_tile(n_rows, row_unit, tm_default, prefer_multi_tile):
    """Row tile: balanced so padding waste stays < row tile, multiple of row_unit."""
    n_round = _round_up(max(int(n_rows), 1), row_unit)
    if n_round <= tm_default:
        tm = n_round
        # v7x: guarantee >=2 row tiles so the parallel axis shards across both TCs.
        if prefer_multi_tile and tm >= 2 * row_unit:
            tm = _round_up(_cdiv(n_round, 2), row_unit)
        return tm
    n_tiles = _cdiv(n_round, tm_default)
    return _round_up(_cdiv(n_round, n_tiles), row_unit)


# ----------------------------------------------------------------------------
# Kernels
# ----------------------------------------------------------------------------
def _ffn_partial(x_ref, w1_ref, b1_ref, w2_ref):
    """relu(x @ W_h^T + b_h) @ W_f^T for one d_f slab, f32 partial product."""
    s = jnp.dot(x_ref[...], w1_ref[...],
                preferred_element_type=jnp.float32) + b1_ref[...]
    h = jnp.maximum(s, 0.0)                      # ReLU; dropout: identity (eval mode)
    return jnp.dot(h.astype(w2_ref.dtype), w2_ref[...],
                   preferred_element_type=jnp.float32)


def _ffn_kernel_f32out(x_ref, w1_ref, b1_ref, w2_ref, b2_ref, o_ref):
    """f32 output: accumulate directly into the resident output block (no scratch)."""
    k = pl.program_id(1)
    p = _ffn_partial(x_ref, w1_ref, b1_ref, w2_ref)

    @pl.when(k == 0)
    def _():
        o_ref[...] = p + b2_ref[...]             # fused init + bias

    @pl.when(k > 0)
    def _():
        o_ref[...] += p


def _ffn_kernel_acc(x_ref, w1_ref, b1_ref, w2_ref, b2_ref, o_ref, acc_ref):
    """Non-f32 output: f32 VMEM accumulator, single cast/store at the last k."""
    k = pl.program_id(1)
    p = _ffn_partial(x_ref, w1_ref, b1_ref, w2_ref)

    @pl.when(k == 0)
    def _():
        acc_ref[...] = p + b2_ref[...]           # fused init + bias

    @pl.when(k > 0)
    def _():
        acc_ref[...] += p

    @pl.when(k == pl.num_programs(1) - 1)
    def _():
        o_ref[...] = acc_ref[...].astype(o_ref.dtype)


# ----------------------------------------------------------------------------
# Wrappers
# ----------------------------------------------------------------------------
def ffn_prepare_params(w_h, b_h, w_f, b_f, *, compute_dtype=jnp.bfloat16, tf_pref=512):
    """One-time weight layout prep (hoisted out of the per-call forward).

    w_h: [d_f, d_model], w_f: [d_model, d_f] (PyTorch Linear [out, in] convention).
    Returns (w1, b1, w2, b2):
      w1 [dm_p, df_p] compute_dtype, b1 [1, df_p] f32,
      w2 [df_p, dm_p] compute_dtype, b2 [1, dm_p] f32.
    """
    d_f, d_model = w_h.shape
    dm_p = _round_up(d_model, _LANE)
    _, df_p = _pick_tf(d_f, tf_pref)
    w1 = jnp.pad(w_h.T.astype(compute_dtype),
                 ((0, dm_p - d_model), (0, df_p - d_f)))
    w2 = jnp.pad(w_f.T.astype(compute_dtype),
                 ((0, df_p - d_f), (0, dm_p - d_model)))
    b1 = jnp.pad(b_h.astype(jnp.float32), (0, df_p - d_f)).reshape(1, df_p)
    b2 = jnp.pad(b_f.astype(jnp.float32), (0, dm_p - d_model)).reshape(1, dm_p)
    return w1, b1, w2, b2


@functools.partial(jax.jit, static_argnames=("tm",))
def ffn_forward_prepared(x, w1, b1, w2, b2, *, tm=None):
    """x: [batch, seq, d_model]; (w1, b1, w2, b2) from ffn_prepare_params."""
    batch, seq, d_model = x.shape
    N = batch * seq
    out_dtype = jnp.dtype(x.dtype)
    compute_dtype = jnp.dtype(w1.dtype)
    dm_p, df_p = w1.shape
    assert dm_p == _round_up(d_model, _LANE), "weights prepared for a different d_model"

    generation, vmem_cap = _tpu_generation()
    cdt_bytes = compute_dtype.itemsize
    out_bytes = out_dtype.itemsize
    use_acc_scratch = out_dtype != jnp.dtype(jnp.float32)
    row_unit = 16 if cdt_bytes < 4 else 8           # bf16 packs 16 sublanes / vreg

    # ---- tile sizes --------------------------------------------------------
    tf, _ = _pick_tf(df_p)
    if tm is None:
        tm_default = {"v7x": 512, "v6e": 1024, "v5e": 512}.get(generation, 512)
    else:
        tm_default = max(row_unit, _round_up(int(tm), row_unit))
    tm_sel = _pick_row_tile(N, row_unit, tm_default,
                            prefer_multi_tile=(generation == "v7x"))

    w_bufs = 3 if generation == "v5e" else 2        # weight-slab pipeline depth

    def vmem_need(tm_, tf_):
        need = (2 * tm_ * dm_p * cdt_bytes          # x tile (double-buffered)
                + w_bufs * dm_p * tf_ * cdt_bytes   # W_h^T slab
                + w_bufs * tf_ * dm_p * cdt_bytes   # W_f^T slab
                + 2 * tf_ * 4 + 2 * dm_p * 4        # bias slabs
                + 2 * tm_ * dm_p * out_bytes)       # output tile
        if use_acc_scratch:
            need += tm_ * dm_p * 4                  # f32 accumulator
        return need

    budget = max(8 * 1024 * 1024, vmem_cap * 3 // 4)
    while vmem_need(tm_sel, tf) > budget and tm_sel > row_unit:
        tm_sel = max(row_unit, _round_up(tm_sel // 2, row_unit))
    while vmem_need(tm_sel, tf) > budget and tf > _LANE:
        new_tf = tf - _LANE
        while new_tf > _LANE and df_p % new_tf != 0:
            new_tf -= _LANE
        tf = new_tf

    n_rows = _round_up(max(N, 1), row_unit)
    n_row_tiles = _cdiv(n_rows, tm_sel)
    n_p = n_row_tiles * tm_sel
    n_k = df_p // tf
    grid = (n_row_tiles, n_k)

    # ---- activations: cast/pad only when it is not a no-op ------------------
    x2d = x.reshape(N, d_model)
    if x2d.dtype != compute_dtype:
        x2d = x2d.astype(compute_dtype)
    if (n_p != N) or (dm_p != d_model):
        x2d = jnp.pad(x2d, ((0, n_p - N), (0, dm_p - d_model)))

    vmem_limit = int(min(max(vmem_need(tm_sel, tf) * 5 // 4, 32 * 1024 * 1024),
                         vmem_cap))

    cost = pl.CostEstimate(
        flops=int(4 * n_p * dm_p * df_p),           # two matmuls
        transcendentals=0,
        bytes_accessed=int(
            n_p * dm_p * cdt_bytes                          # x (resident across k)
            + n_row_tiles * 2 * dm_p * df_p * cdt_bytes     # weights re-streamed / row tile
            + n_row_tiles * (df_p + dm_p) * 4               # bias slabs
            + n_p * dm_p * out_bytes))                      # output

    # ---- BlockSpecs ----------------------------------------------------------
    if generation == "v5e" and n_k >= 3:
        w1_spec = pl.BlockSpec((dm_p, tf), lambda i, k: (0, k),
                               pipeline_mode=pl.Buffered(3))
        w2_spec = pl.BlockSpec((tf, dm_p), lambda i, k: (k, 0),
                               pipeline_mode=pl.Buffered(3))
    else:
        w1_spec = pl.BlockSpec((dm_p, tf), lambda i, k: (0, k))
        w2_spec = pl.BlockSpec((tf, dm_p), lambda i, k: (k, 0))

    in_specs = [
        pl.BlockSpec((tm_sel, dm_p), lambda i, k: (i, 0)),   # x tile (reused over k)
        w1_spec,                                             # W_h^T slab
        pl.BlockSpec((1, tf), lambda i, k: (0, k)),          # b_h slab
        w2_spec,                                             # W_f^T slab
        pl.BlockSpec((1, dm_p), lambda i, k: (0, 0)),        # b_f
    ]
    out_spec = pl.BlockSpec((tm_sel, dm_p), lambda i, k: (i, 0))

    if use_acc_scratch:
        kernel = _ffn_kernel_acc
        scratch = [pltpu.VMEM((tm_sel, dm_p), jnp.float32)]
    else:
        kernel = _ffn_kernel_f32out
        scratch = []

    out = pl.pallas_call(
        kernel,
        out_shape=jax.ShapeDtypeStruct((n_p, dm_p), out_dtype),
        grid_spec=pltpu.PrefetchScalarGridSpec(
            num_scalar_prefetch=0,
            grid=grid,
            in_specs=in_specs,
            out_specs=out_spec,
            scratch_shapes=scratch),
        compiler_params=pltpu.CompilerParams(
            dimension_semantics=("parallel", "arbitrary"),
            vmem_limit_bytes=vmem_limit),
        cost_estimate=cost,
    )(x2d, w1, b1, w2, b2)

    return out[:N, :d_model].reshape(batch, seq, d_model)


def ffn_forward(x, w_h, b_h, w_f, b_f, *, compute_dtype=jnp.bfloat16, tm=None):
    """Convenience wrapper: prepare weights then run. For repeated calls, call
    ffn_prepare_params once and reuse the result with ffn_forward_prepared."""
    params = ffn_prepare_params(w_h, b_h, w_f, b_f, compute_dtype=compute_dtype)
    return ffn_forward_prepared(x, *params, tm=tm)


def ffn_reference(x, w_h, b_h, w_f, b_f):
    s_i = jnp.einsum("bsd,fd->bsf", x, w_h) + b_h
    h_i = jnp.maximum(s_i, 0.0)
    return jnp.einsum("bsf,df->bsd", h_i, w_f) + b_f


if __name__ == "__main__":
    d_model, d_f = 32, 64
    batch, seq = 2, 8

    key = jax.random.PRNGKey(0)
    kx, k1, k2, k3, k4 = jax.random.split(key, 5)

    # Deterministic init (mimics nn.Linear uniform(-1/sqrt(in), 1/sqrt(in))).
    bound_h = 1.0 / jnp.sqrt(d_model)
    bound_f = 1.0 / jnp.sqrt(d_f)
    w_h = jax.random.uniform(k1, (d_f, d_model), jnp.float32, -bound_h, bound_h)
    b_h = jax.random.uniform(k2, (d_f,), jnp.float32, -bound_h, bound_h)
    w_f = jax.random.uniform(k3, (d_model, d_f), jnp.float32, -bound_f, bound_f)
    b_f = jax.random.uniform(k4, (d_model,), jnp.float32, -bound_f, bound_f)

    x = jax.random.normal(kx, (batch, seq, d_model), jnp.float32)

    ref = ffn_reference(x, w_h, b_h, w_f, b_f)

    # f32 compute path: structural check, tight tolerance (f32-out kernel, no scratch).
    p_f32 = ffn_prepare_params(w_h, b_h, w_f, b_f, compute_dtype=jnp.float32)
    out_f32 = jax.block_until_ready(ffn_forward_prepared(x, *p_f32))
    assert out_f32.shape == (batch, seq, d_model)
    assert not bool(jnp.isnan(out_f32).any())
    assert bool(jnp.allclose(out_f32, ref, atol=1e-5, rtol=1e-5))

    # bf16 MXU path with f32 activations in / out (f32-out kernel).
    p_bf16 = ffn_prepare_params(w_h, b_h, w_f, b_f, compute_dtype=jnp.bfloat16)
    out_bf16 = jax.block_until_ready(ffn_forward_prepared(x, *p_bf16))
    assert out_bf16.shape == (batch, seq, d_model)
    assert not bool(jnp.isnan(out_bf16).any())
    assert bool(jnp.allclose(out_bf16, ref, atol=3e-2, rtol=3e-2))

    # bf16 activations in / out (exercises the f32-scratch-accumulator kernel).
    out_bf16_io = jax.block_until_ready(
        ffn_forward_prepared(x.astype(jnp.bfloat16), *p_bf16))
    assert out_bf16_io.dtype == jnp.bfloat16
    assert not bool(jnp.isnan(out_bf16_io.astype(jnp.float32)).any())
    assert bool(jnp.allclose(out_bf16_io.astype(jnp.float32), ref,
                             atol=5e-2, rtol=5e-2))

    # Convenience wrapper path.
    out_conv = jax.block_until_ready(ffn_forward(x, w_h, b_h, w_f, b_f))
    assert bool(jnp.allclose(out_conv, ref, atol=3e-2, rtol=3e-2))

    print("KERNEL_OK")
</pallas_src>

<mosaic_0001>
module attributes {stable_mosaic.version = 11 : i64} {
  func.func @_ffn_kernel_f32out(%arg0: i32, %arg1: i32, %arg2: memref<16x128xf32, #tpu.memory_space<vmem>>, %arg3: memref<128x128xf32, #tpu.memory_space<vmem>>, %arg4: memref<1x128xf32, #tpu.memory_space<vmem>>, %arg5: memref<128x128xf32, #tpu.memory_space<vmem>>, %arg6: memref<1x128xf32, #tpu.memory_space<vmem>>, %arg7: memref<16x128xf32, #tpu.memory_space<vmem>>) attributes {dimension_semantics = [#tpu.dimension_semantics<parallel>, #tpu.dimension_semantics<arbitrary>], iteration_bounds = array<i64: 1, 1>, scalar_prefetch = 0 : i64, scratch_operands = 0 : i64, tpu.core_type = #tpu.core_type<tc>, window_params = [{transform_indices = @transform_0, window_bounds = array<i64: 16, 128>}, {transform_indices = @transform_1, window_bounds = array<i64: 128, 128>}, {transform_indices = @transform_2, window_bounds = array<i64: 1, 128>}, {transform_indices = @transform_3, window_bounds = array<i64: 128, 128>}, {pipeline_mode = #tpu.pipeline_mode<synchronous>, transform_indices = @transform_4, window_bounds = array<i64: 1, 128>}, {transform_indices = @transform_5, window_bounds = array<i64: 16, 128>}]} {
    %c0 = arith.constant 0 : index
    %c0_0 = arith.constant 0 : index
    %0 = vector.load %arg2[%c0, %c0_0] : memref<16x128xf32, #tpu.memory_space<vmem>>, vector<16x128xf32>
    %c0_1 = arith.constant 0 : index
    %c0_2 = arith.constant 0 : index
    %1 = vector.load %arg3[%c0_1, %c0_2] : memref<128x128xf32, #tpu.memory_space<vmem>>, vector<128x128xf32>
    %cst = arith.constant dense<0.000000e+00> : vector<16x128xf32>
    %2 = tpu.matmul %0, %1, %cst {dimension_numbers = #tpu.dot_dimension_numbers<[1], [0], [0], [1], [0, 0, 1, 1], [], []>} : vector<16x128xf32>, vector<128x128xf32>, vector<16x128xf32> -> vector<16x128xf32>
    %c0_3 = arith.constant 0 : index
    %c0_4 = arith.constant 0 : index
    %3 = vector.load %arg4[%c0_3, %c0_4] : memref<1x128xf32, #tpu.memory_space<vmem>>, vector<1x128xf32>
    %4 = vector.broadcast %3 : vector<1x128xf32> to vector<16x128xf32>
    %5 = arith.addf %2, %4 : vector<16x128xf32>
    %cst_5 = arith.constant 0.000000e+00 : f32
    %6 = vector.broadcast %cst_5 : f32 to vector<16x128xf32>
    %7 = arith.maximumf %5, %6 : vector<16x128xf32>
    %c0_6 = arith.constant 0 : index
    %c0_7 = arith.constant 0 : index
    %8 = vector.load %arg5[%c0_6, %c0_7] : memref<128x128xf32, #tpu.memory_space<vmem>>, vector<128x128xf32>
    %cst_8 = arith.constant dense<0.000000e+00> : vector<16x128xf32>
    %9 = tpu.matmul %7, %8, %cst_8 {dimension_numbers = #tpu.dot_dimension_numbers<[1], [0], [0], [1], [0, 0, 1, 1], [], []>} : vector<16x128xf32>, vector<128x128xf32>, vector<16x128xf32> -> vector<16x128xf32>
    %c0_i32 = arith.constant 0 : i32
    %10 = arith.cmpi eq, %arg1, %c0_i32 : i32
    %11 = arith.extui %10 : i1 to i32
    %c0_i32_9 = arith.constant 0 : i32
    %12 = arith.cmpi ne, %11, %c0_i32_9 : i32
    scf.if %12 {
      %c0_12 = arith.constant 0 : index
      %c0_13 = arith.constant 0 : index
      %16 = vector.load %arg6[%c0_12, %c0_13] : memref<1x128xf32, #tpu.memory_space<vmem>>, vector<1x128xf32>
      %17 = vector.broadcast %16 : vector<1x128xf32> to vector<16x128xf32>
      %18 = arith.addf %9, %17 : vector<16x128xf32>
      %c0_14 = arith.constant 0 : index
      %c0_15 = arith.constant 0 : index
      %19 = vector.load %arg7[%c0_14, %c0_15] : memref<16x128xf32, #tpu.memory_space<vmem>>, vector<16x128xf32>
      tpu.vector_store %arg7[%c0_14, %c0_15], %18 {strides = array<i32>} : memref<16x128xf32, #tpu.memory_space<vmem>>, vector<16x128xf32>,
    } else {
    }
    %c0_i32_10 = arith.constant 0 : i32
    %13 = arith.cmpi sgt, %arg1, %c0_i32_10 : i32
    %14 = arith.extui %13 : i1 to i32
    %c0_i32_11 = arith.constant 0 : i32
    %15 = arith.cmpi ne, %14, %c0_i32_11 : i32
    scf.if %15 {
      %c0_12 = arith.constant 0 : index
      %c0_13 = arith.constant 0 : index
      %16 = vector.load %arg7[%c0_12, %c0_13] : memref<16x128xf32, #tpu.memory_space<vmem>>, vector<16x128xf32>
      %17 = arith.addf %16, %9 : vector<16x128xf32>
      %c0_14 = arith.constant 0 : index
      %c0_15 = arith.constant 0 : index
      %18 = vector.load %arg7[%c0_14, %c0_15] : memref<16x128xf32, #tpu.memory_space<vmem>>, vector<16x128xf32>
      tpu.vector_store %arg7[%c0_14, %c0_15], %17 {strides = array<i32>} : memref<16x128xf32, #tpu.memory_space<vmem>>, vector<16x128xf32>,
    } else {
    }
    return
  }
  func.func @transform_0(%arg0: i32, %arg1: i32) -> (i32, i32) {
    %c0_i32 = arith.constant 0 : i32
    %c0_i32_0 = arith.constant 0 : i32
    return %arg0, %c0_i32 : i32, i32
  }
  func.func @transform_1(%arg0: i32, %arg1: i32) -> (i32, i32) {
    %c0_i32 = arith.constant 0 : i32
    %c0_i32_0 = arith.constant 0 : i32
    return %c0_i32, %arg1 : i32, i32
  }
  func.func @transform_2(%arg0: i32, %arg1: i32) -> (i32, i32) {
    %c0_i32 = arith.constant 0 : i32
    %c0_i32_0 = arith.constant 0 : i32
    return %c0_i32, %arg1 : i32, i32
  }
  func.func @transform_3(%arg0: i32, %arg1: i32) -> (i32, i32) {
    %c0_i32 = arith.constant 0 : i32
    %c0_i32_0 = arith.constant 0 : i32
    return %arg1, %c0_i32 : i32, i32
  }
  func.func @transform_4(%arg0: i32, %arg1: i32) -> (i32, i32) {
    %c0_i32 = arith.constant 0 : i32
    %c0_i32_0 = arith.constant 0 : i32
    %c0_i32_1 = arith.constant 0 : i32
    return %c0_i32, %c0_i32_0 : i32, i32
  }
  func.func @transform_5(%arg0: i32, %arg1: i32) -> (i32, i32) {
    %c0_i32 = arith.constant 0 : i32
    %c0_i32_0 = arith.constant 0 : i32
    return %arg0, %c0_i32 : i32, i32
  }
}

</mosaic_0001>

<bundles_post_ra>
// kernel: ffn_forward_prepared.1
= control target key start
LH: loop header
LB: loop body
LE: loop exit
PB: predicated region body
PF: predicated region fallthrough
CT: control target
= control target key end

     0   :  { %10 = vsyncpa [#allocation3], 0  ;;  %s486_s0 = inlined_call_operand.vmem [shape: f32[16,128], index: 0, kind: input, shape index: {}]   ;;  %s487_s1 = inlined_call_operand.hbm [shape: f32[128,128], index: 1, kind: input, shape index: {}]   ;;  %s488_s2 = inlined_call_operand.vmem [shape: f32[1,128], index: 2, kind: input, shape index: {}]   ;;  %s489_s3 = inlined_call_operand.hbm [shape: f32[128,128], index: 3, kind: input, shape index: {}]   ;;  %s490_s4 = inlined_call_operand.vmem [shape: f32[1,128], index: 4, kind: input, shape index: {}]   ;;  %s491_s5 = inlined_call_operand.vmem [shape: f32[16,128], index: 5, kind: output, shape index: {}]  }
   0x1   :  { %11 = vsyncpa [#allocation5], 0  ;;  %s428_s18 = smov [#allocation2]  }
   0x2   :  { %s19_s19 = sshll.u32 %s428_s18, 4  ;;  %s20_s19 = int_to_ptr.vmem [resolvable:$true] %s19_s19 }
   0x3   :  { %s392_s20 = scalar_lea.vmem %s20_s19, 2048  ;;  %p397_p1 = scmp.lt.s32.totalorder %s20_s19, %s20_s19 }
   0x4   :  { %p393_p0 = scmp.ne.s32.totalorder %s20_s19, %s392_s20  ;;  %p398_p2 = scmp.lt.s32.totalorder %s392_s20, %s392_s20 }
   0x6   :  { %p399_p3 = por %p398_p2, %p397_p1 }
   0x8   :  { %p400_p4 = pnand %p399_p3, %p393_p0 }
   0xa   :  { %403 = shalt.err (!%p400_p4)
}
   0xb   :  { %s429_s21 = smov 128   ;;  %s430_s22 = smov 8  }
   0xc   :  { %25 = dma.hbm_to_vmem [thread:$0]  %s487_s1, 2048, %s20_s19, [#allocation3], %s429_s21, %s429_s21, %s430_s22  }
   0xd   :  { %s431_s25 = smov [#allocation4]  }
   0xe   :  { %s33_s26 = sshll.u32 %s431_s25, 4  ;;  %s34_s26 = int_to_ptr.vmem [resolvable:$true] %s33_s26 }
   0xf   :  { %s412_s27 = scalar_lea.vmem %s34_s26, 2048  ;;  %p417_p6 = scmp.lt.s32.totalorder %s34_s26, %s34_s26 }
  0x10   :  { %p413_p5 = scmp.ne.s32.totalorder %s34_s26, %s412_s27  ;;  %p418_p7 = scmp.lt.s32.totalorder %s412_s27, %s412_s27 }
  0x12   :  { %p419_p8 = por %p418_p7, %p417_p6 }
  0x14   :  { %p420_p9 = pnand %p419_p8, %p413_p5 }
  0x16   :  { %423 = shalt.err (!%p420_p9)
}
  0x17   :  { %39 = dma.hbm_to_vmem [thread:$0]  %s489_s3, 2048, %s34_s26, [#allocation5], %s429_s21, %s429_s21, %s430_s22  }
  0x18   :  { %424 = dma.done.wait [#allocation3], 2048  }
  0x19   :  { %425 = vsyncadd [#allocation3], 4294965248 }
  0x1a   :  { %426 = dma.done.wait [#allocation5], 2048  }
  0x1b   :  { %427 = vsyncadd [#allocation5], 4294965248  ;;  %v65_v0 = vld [vmem:[#allocation2 + $0x78] sm:$0xff]  ;;  %v64_v1 = vld [vmem:[#allocation2 + $0x70] sm:$0xff] }
  0x1c   :  { %310 = vmatprep.subr.mxu0 %v65_v0  ;;  %v63_v2 = vld [vmem:[#allocation2 + $0x68] sm:$0xff]  ;;  %v62_v3 = vld [vmem:[#allocation2 + $0x60] sm:$0xff]  ;;  %v61_v5 = vld [vmem:[#allocation2 + $0x58] sm:$0xff] }
  0x1d   :  { %311 = vmatpush3.msra.mxu0 %v65_v0  ;;  %v48_v4 = vld [vmem:[%s486_s0] sm:$0xff]  ;;  %v165_v6 = vld [vmem:[#allocation4 + $0x78] sm:$0xff]  ;;  %v164_v7 = vld [vmem:[#allocation4 + $0x70] sm:$0xff] }
  0x1e   :  { %312 = vmatprep.subr.mxu0 %v64_v1  ;;  %342 = vmatprep.mubr.f32.mxu0 %v48_v4  ;;  %v60_v8 = vld [vmem:[#allocation2 + $0x50] sm:$0xff]  ;;  %v163_v9 = vld [vmem:[#allocation4 + $0x68] sm:$0xff]  ;;  %v162_v11 = vld [vmem:[#allocation4 + $0x60] sm:$0xff] }
  0x1f   :  { %313 = vmatpush3.msra.mxu0 %v64_v1  ;;  %345 = vmatprep.subr.mxu1 %v165_v6  ;;  %v59_v10 = vld [vmem:[#allocation2 + $0x48] sm:$0xff]  ;;  %v58_v12 = vld [vmem:[#allocation2 + $0x40] sm:$0xff]  ;;  %v161_v13 = vld [vmem:[#allocation4 + $0x58] sm:$0xff] }
  0x20   :  { %314 = vmatprep.subr.mxu0 %v63_v2  ;;  %346 = vmatpush3.msra.mxu1 %v165_v6  ;;  %v57_v14 = vld [vmem:[#allocation2 + $0x38] sm:$0xff]  ;;  %v160_v15 = vld [vmem:[#allocation4 + $0x50] sm:$0xff]  ;;  %v159_v17 = vld [vmem:[#allocation4 + $0x48] sm:$0xff] }
  0x21   :  { %315 = vmatpush3.msra.mxu0 %v63_v2  ;;  %347 = vmatprep.subr.mxu1 %v164_v7  ;;  %v56_v16 = vld [vmem:[#allocation2 + $0x30] sm:$0xff]  ;;  %v55_v18 = vld [vmem:[#allocation2 + $0x28] sm:$0xff]  ;;  %v158_v19 = vld [vmem:[#allocation4 + $0x40] sm:$0xff] }
  0x22   :  { %316 = vmatprep.subr.mxu0 %v62_v3  ;;  %348 = vmatpush3.msra.mxu1 %v164_v7  ;;  %v54_v20 = vld [vmem:[#allocation2 + $0x20] sm:$0xff]  ;;  %v157_v21 = vld [vmem:[#allocation4 + $0x38] sm:$0xff]  ;;  %v156_v23 = vld [vmem:[#allocation4 + $0x30] sm:$0xff] }
  0x23   :  { %317 = vmatpush3.msra.mxu0 %v62_v3  ;;  %349 = vmatprep.subr.mxu1 %v163_v9  ;;  %v53_v22 = vld [vmem:[#allocation2 + $0x18] sm:$0xff]  ;;  %v52_v24 = vld [vmem:[#allocation2 + $0x10] sm:$0xff]  ;;  %v155_v25 = vld [vmem:[#allocation4 + $0x28] sm:$0xff] }
  0x24   :  { %318 = vmatprep.subr.mxu0 %v61_v5  ;;  %350 = vmatpush3.msra.mxu1 %v163_v9  ;;  %v51_v26 = vld [vmem:[#allocation2 + $0x8] sm:$0xff]  ;;  %v154_v27 = vld [vmem:[#allocation4 + $0x20] sm:$0xff]  ;;  %v153_v30 = vld [vmem:[#allocation4 + $0x18] sm:$0xff] }
  0x25   :  { %319 = vmatpush3.msra.mxu0 %v61_v5  ;;  %351 = vmatprep.subr.mxu1 %v162_v11  ;;  %v50_v28 = vld [vmem:[#allocation2] sm:$0xff]  ;;  %v49_v29 = vld [vmem:[%s486_s0 + $0x8] sm:$0xff]  ;;  %v152_v31 = vld [vmem:[#allocation4 + $0x10] sm:$0xff] }
  0x26   :  { %320 = vmatprep.subr.mxu0 %v60_v8  ;;  %352 = vmatpush3.msra.mxu1 %v162_v11  ;;  %v151_v32 = vld [vmem:[#allocation4 + $0x8] sm:$0xff]  ;;  %v150_v33 = vld [vmem:[#allocation4] sm:$0xff] }
  0x27   :  { %321 = vmatpush3.msra.mxu0 %v60_v8  ;;  %353 = vmatprep.subr.mxu1 %v161_v13  ;;  %v272_v34 = vld [vmem:[%s488_s2] ss:$0 sm:$0xff] }
  0x28   :  { %322 = vmatprep.subr.mxu0 %v59_v10  ;;  %354 = vmatpush3.msra.mxu1 %v161_v13  ;;  %v273_v41 = vld [vmem:[%s490_s4] ss:$0 sm:$0xff] }
  0x29   :  { %323 = vmatpush3.msra.mxu0 %v59_v10  ;;  %355 = vmatprep.subr.mxu1 %v160_v15 }
  0x2a   :  { %324 = vmatprep.subr.mxu0 %v58_v12  ;;  %356 = vmatpush3.msra.mxu1 %v160_v15 }
  0x2b   :  { %325 = vmatpush3.msra.mxu0 %v58_v12  ;;  %357 = vmatprep.subr.mxu1 %v159_v17 }
  0x2c   :  { %326 = vmatprep.subr.mxu0 %v57_v14  ;;  %358 = vmatpush3.msra.mxu1 %v159_v17 }
  0x2d   :  { %327 = vmatpush3.msra.mxu0 %v57_v14  ;;  %359 = vmatprep.subr.mxu1 %v158_v19 }
  0x2e   :  { %328 = vmatprep.subr.mxu0 %v56_v16  ;;  %360 = vmatpush3.msra.mxu1 %v158_v19 }
  0x2f   :  { %329 = vmatpush3.msra.mxu0 %v56_v16  ;;  %361 = vmatprep.subr.mxu1 %v157_v21 }
  0x30   :  { %330 = vmatprep.subr.mxu0 %v55_v18  ;;  %362 = vmatpush3.msra.mxu1 %v157_v21 }
  0x31   :  { %331 = vmatpush3.msra.mxu0 %v55_v18  ;;  %363 = vmatprep.subr.mxu1 %v156_v23 }
  0x32   :  { %332 = vmatprep.subr.mxu0 %v54_v20  ;;  %364 = vmatpush3.msra.mxu1 %v156_v23 }
  0x33   :  { %333 = vmatpush3.msra.mxu0 %v54_v20  ;;  %365 = vmatprep.subr.mxu1 %v155_v25 }
  0x34   :  { %334 = vmatprep.subr.mxu0 %v53_v22  ;;  %366 = vmatpush3.msra.mxu1 %v155_v25 }
  0x35   :  { %335 = vmatpush3.msra.mxu0 %v53_v22  ;;  %367 = vmatprep.subr.mxu1 %v154_v27 }
  0x36   :  { %336 = vmatprep.subr.mxu0 %v52_v24  ;;  %368 = vmatpush3.msra.mxu1 %v154_v27 }
  0x37   :  { %337 = vmatpush3.msra.mxu0 %v52_v24  ;;  %369 = vmatprep.subr.mxu1 %v153_v30 }
  0x38   :  { %338 = vmatprep.subr.mxu0 %v51_v26  ;;  %370 = vmatpush3.msra.mxu1 %v153_v30 }
  0x39   :  { %339 = vmatpush3.msra.mxu0 %v51_v26  ;;  %371 = vmatprep.subr.mxu1 %v152_v31 }
  0x3a   :  { %340 = vmatprep.subr.mxu0 %v50_v28  ;;  %372 = vmatpush3.msra.mxu1 %v152_v31 }
  0x3b   :  { %341 = vmatpush3.msra.mxu0 %v50_v28  ;;  %373 = vmatprep.subr.mxu1 %v151_v32 }
  0x3c   :  { %343 = vmatmul.mubr.f32.vlgmr.msra.gmra.mxu0 %v49_v29  ;;  %374 = vmatpush3.msra.mxu1 %v151_v32 }
  0x3d   :  { %375 = vmatprep.subr.mxu1 %v150_v33 }
  0x3e   :  { %376 = vmatpush3.msra.mxu1 %v150_v33 }
  0xfc   :  { %v344_v35 = vpop.f32.mrf.mxu0 }
  0xfd   :  { %v145_v36 = vadd.f32 %v344_v35, %v272_v34 }
  0xfe   :  { %v139_v37 = vpop.f32.mrf.mxu0 }
  0xff   :  { %v140_v38 = vadd.f32 %v272_v34, %v139_v37  ;;  %v149_v40 = vmax.f32 %v145_v36, 0.0 }
 0x101   :  { %v148_v39 = vmax.f32 %v140_v38, 0.0 }
 0x103   :  { %377 = vmatprep.mubr.f32.mxu1 %v148_v39 }
 0x104   :  { %378 = vmatmul.mubr.f32.vlgmr.msra.gmra.mxu1 %v149_v40 }
 0x1c4   :  { %v379_v42 = vpop.f32.mrf.mxu1 }
 0x1c5   :  { %v253_v43 = vadd.f32 %v379_v42, %v273_v41 }
 0x1c6   :  { %v232_v44 = vpop.f32.mrf.mxu1 }
 0x1c7   :  { %255 = vst [vmem:[%s491_s5 + $0x8] sm:$0xff] %v253_v43  ;;  %v252_v45 = vadd.f32 %v273_v41, %v232_v44 }
 0x1c9   :  { %254 = vst [vmem:[%s491_s5] sm:$0xff] %v252_v45 }
 0x1ca   :  { %270 = vsyncpa [#allocation3], 1 }
 0x1cb   :  { %271 = vsyncpa [#allocation5], 1 }

</bundles_post_ra>
